<compile_context>
chip_gen: v6e
topology: v6e:2x2x1
jax: 0.10.0
libtpu: 0.0.40
codegen_flags: <defaults>
</compile_context>

<pallas_src>
import jax
import jax.numpy as jnp
from jax.experimental import pallas as pl
from jax.experimental.pallas import tpu as pltpu


def _round_up(x, m):
    return ((x + m - 1) // m) * m


def value_mlp_kernel(x_ref, w1_ref, b1_ref, w2_ref, b2_ref, w3_ref, b3_ref, o_ref):
    """One batch tile of the value MLP, computed with batch in the *lane* dim.

    x_ref : (TILE_B, S)   state tile, streamed from HBM (f32 or bf16)
    w1    : (H, S), b1: (H, 1)   -- torch (out, in) layout, biases stored as columns
    w2    : (H, H), b2: (H, 1)
    w3    : (H, 1), b3: (1, 1) scalar in SMEM
    o_ref : (1, TILE_B)   lane-dense output row
    """
    # Upcast the (possibly bf16) state tile in VMEM so MXU operand dtypes match the
    # weights; all accumulation is f32.
    x = x_ref[...].astype(w1_ref.dtype)

    # Layer 1: h1^T = W1 @ x^T, written as one dot_general contracting both last
    # dims (same pattern as q @ k^T in attention) so no transpose of the state tile
    # is materialized. Result (H, TILE_B): batch lives in lanes from here on.
    h1 = jax.lax.dot_general(
        w1_ref[...], x,
        dimension_numbers=(((1,), (1,)), ((), ())),
        preferred_element_type=jnp.float32)
    h1 = jnp.maximum(h1 + b1_ref[...], 0.0)           # bias/ReLU on packed 128-lane vregs

    # Layer 2: h2^T = W2 @ h1^T (standard MXU matmul, N = TILE_B).
    h2 = jnp.dot(w2_ref[...], h1.astype(w2_ref.dtype),
                 preferred_element_type=jnp.float32)
    h2 = jnp.maximum(h2 + b2_ref[...], 0.0)

    # Layer 3 (out_features = 1): VPU multiply + cross-sublane reduce. This produces
    # the lane-dense (1, TILE_B) row directly: no relayout, no masked stores, and no
    # N=1 MXU matmul that would waste a full MXU tile.
    v = jnp.sum(h2 * w3_ref[...].astype(jnp.float32), axis=0, keepdims=True)
    o_ref[...] = (v + b3_ref[0, 0]).astype(o_ref.dtype)


def value_function_forward(state, params, *, tile_b=8192):
    """state: (B, state_dim) -> (B,) f32. Matches ValueFunction.forward (squeeze_output)."""
    w1, b1, w2, b2, w3, b3 = params
    B, state_dim = state.shape
    hidden = w1.shape[0]
    b3 = b3.reshape(1, 1).astype(jnp.float32)          # scalar bias lives in SMEM

    elt_x = jnp.dtype(state.dtype).itemsize
    param_bytes = sum(int(a.size) * jnp.dtype(a.dtype).itemsize
                      for a in (w1, b1, w2, b2, w3, b3))

    def vmem_est(t):
        # double-buffered state tiles + double-buffered sublane-padded output rows
        # + h1/h2 (+ temp) intermediates + double-buffered params + fixed slack.
        return (2 * t * state_dim * elt_x + 2 * 8 * t * 4
                + 3 * hidden * t * 4 + 2 * param_bytes + (2 << 20))

    # Batch tiling. Big tiles amortize the ~0.35 us per-grid-step overhead; once
    # B > 256 we always make >= 2 tiles (so the "parallel" axis can shard across
    # v7x's two TensorCores) and clamp the tile against a VMEM budget that is safe
    # for v7x's 64 MiB per-core VMEM. No wrapper-side jnp.pad: ragged edge blocks
    # are fine because out-of-range rows compute per-row garbage that is never
    # written back (there is no cross-row reduction in the kernel).
    tile_b = max(128, (int(tile_b) // 128) * 128)
    if B <= 256:
        tile = B                                        # single block == full array
    else:
        tile = min(tile_b, _round_up(pl.cdiv(B, 2), 128))
        budget = 40 << 20
        while tile > 128 and vmem_est(tile) > budget:
            tile -= 128
    num_tiles = pl.cdiv(B, tile)
    vmem_limit = int(min(64 << 20, max(32 << 20, int(1.5 * vmem_est(tile)))))

    cost = pl.CostEstimate(
        flops=2 * B * (state_dim * hidden + hidden * hidden + hidden),
        transcendentals=0,
        bytes_accessed=B * state_dim * elt_x + B * 4 + param_bytes,
    )

    const = lambda a: pl.BlockSpec(a.shape, lambda i: (0,) * a.ndim)
    out = pl.pallas_call(
        value_mlp_kernel,
        out_shape=jax.ShapeDtypeStruct((1, B), jnp.float32),
        grid=(num_tiles,),
        in_specs=[
            pl.BlockSpec((tile, state_dim), lambda i: (i, 0)),        # streamed state
            const(w1), const(b1), const(w2), const(b2), const(w3),    # VMEM-resident
            pl.BlockSpec(memory_space=pltpu.MemorySpace.SMEM),        # b3 scalar
        ],
        out_specs=pl.BlockSpec((1, tile), lambda i: (0, i)),          # lane-dense row
        compiler_params=pltpu.CompilerParams(
            dimension_semantics=("parallel",),
            vmem_limit_bytes=vmem_limit),
        cost_estimate=cost,
    )(state, w1, b1, w2, b2, w3, b3)

    return out[0]                                       # squeeze_output=True -> (B,)


def init_params(key, state_dim, hidden_dim):
    """torch.nn.Linear-style init (U(-1/sqrt(fan_in), +1/sqrt(fan_in))).

    Weights are kept in torch (out_features, in_features) layout; biases are stored
    as (out_features, 1) columns so they broadcast over the lane (batch) dim in the
    kernel. The final layer's weight is stored as a (hidden, 1) column and its bias
    as a (1, 1) scalar. n_hidden is fixed at 2 (the module default)."""
    def linear(k, fan_in, fan_out):
        kw, kb = jax.random.split(k)
        bound = float(fan_in) ** -0.5
        w = jax.random.uniform(kw, (fan_out, fan_in), jnp.float32, -bound, bound)
        b = jax.random.uniform(kb, (fan_out, 1), jnp.float32, -bound, bound)
        return w, b

    k1, k2, k3 = jax.random.split(key, 3)
    w1, b1 = linear(k1, state_dim, hidden_dim)
    w2, b2 = linear(k2, hidden_dim, hidden_dim)
    w3, b3 = linear(k3, hidden_dim, 1)                  # w3: (1, hidden), b3: (1, 1)
    return (w1, b1, w2, b2, w3.T, b3)                   # store w3 as (hidden, 1) column


def reference_forward(state, params):
    """Pure-JAX reference of ValueFunction.forward (f32, highest matmul precision)."""
    w1, b1, w2, b2, w3, b3 = params
    hp = jax.lax.Precision.HIGHEST
    x = state.astype(jnp.float32)
    h1 = jnp.maximum(jnp.dot(x, w1.T, precision=hp) + b1[:, 0], 0.0)
    h2 = jnp.maximum(jnp.dot(h1, w2.T, precision=hp) + b2[:, 0], 0.0)
    return jnp.sum(h2 * w3[:, 0], axis=-1) + b3[0, 0]


if __name__ == "__main__":
    state_dim, hidden_dim = 16, 32

    key = jax.random.PRNGKey(0)
    key, kp, k1, k2 = jax.random.split(key, 4)
    params = init_params(kp, state_dim, hidden_dim)

    s_small = jax.random.normal(k1, (8, state_dim), jnp.float32)
    s_big = jax.random.normal(k2, (300, state_dim), jnp.float32)

    # 1) tiny batch -> single block (block shape == full array shape).
    out = jax.block_until_ready(value_function_forward(s_small, params))
    ref = reference_forward(s_small, params)
    assert out.shape == (8,), out.shape
    assert jnp.allclose(out, ref, atol=1e-3, rtol=1e-3), float(jnp.max(jnp.abs(out - ref)))

    # 2) default tiling on B=300 -> 2 tiles of 256 rows, ragged last block (no pad copy).
    ref_big = reference_forward(s_big, params)
    out = jax.block_until_ready(value_function_forward(s_big, params))
    assert out.shape == (300,), out.shape
    assert jnp.allclose(out, ref_big, atol=1e-3, rtol=1e-3), float(jnp.max(jnp.abs(out - ref_big)))

    # 3) explicit small tile -> 3-step grid, exercises multi-step BlockSpec pipelining.
    out = jax.block_until_ready(value_function_forward(s_big, params, tile_b=128))
    assert out.shape == (300,), out.shape
    assert jnp.allclose(out, ref_big, atol=1e-3, rtol=1e-3), float(jnp.max(jnp.abs(out - ref_big)))

    # 4) bf16 state straight from the caller (halves the dominant HBM read); the
    #    kernel upcasts in VMEM, weights/bias/accumulation stay f32.
    out = jax.block_until_ready(value_function_forward(s_big.astype(jnp.bfloat16), params))
    assert out.shape == (300,), out.shape
    assert jnp.allclose(out, ref_big, atol=5e-2, rtol=5e-2), float(jnp.max(jnp.abs(out - ref_big)))

    print("KERNEL_OK")
</pallas_src>

<mosaic_0001>
module attributes {stable_mosaic.version = 11 : i64} {
  func.func @value_mlp_kernel(%arg0: i32, %arg1: memref<8x16xf32, #tpu.memory_space<vmem>>, %arg2: memref<32x16xf32, #tpu.memory_space<vmem>>, %arg3: memref<32x1xf32, #tpu.memory_space<vmem>>, %arg4: memref<32x32xf32, #tpu.memory_space<vmem>>, %arg5: memref<32x1xf32, #tpu.memory_space<vmem>>, %arg6: memref<32x1xf32, #tpu.memory_space<vmem>>, %arg7: memref<1x1xf32, #tpu.memory_space<smem>>, %arg8: memref<1x8xf32, #tpu.memory_space<vmem>>) attributes {dimension_semantics = [#tpu.dimension_semantics<parallel>], iteration_bounds = array<i64: 1>, scalar_prefetch = 0 : i64, scratch_operands = 0 : i64, tpu.core_type = #tpu.core_type<tc>, window_params = [{transform_indices = @transform_0, window_bounds = array<i64: 8, 16>}, {pipeline_mode = #tpu.pipeline_mode<synchronous>, transform_indices = @transform_1, window_bounds = array<i64: 32, 16>}, {pipeline_mode = #tpu.pipeline_mode<synchronous>, transform_indices = @transform_2, window_bounds = array<i64: 32, 1>}, {pipeline_mode = #tpu.pipeline_mode<synchronous>, transform_indices = @transform_3, window_bounds = array<i64: 32, 32>}, {pipeline_mode = #tpu.pipeline_mode<synchronous>, transform_indices = @transform_4, window_bounds = array<i64: 32, 1>}, {pipeline_mode = #tpu.pipeline_mode<synchronous>, transform_indices = @transform_5, window_bounds = array<i64: 32, 1>}, {transform_indices = @transform_6, window_bounds = array<i64: 1, 1>}, {transform_indices = @transform_7, window_bounds = array<i64: 1, 8>}]} {
    %c0 = arith.constant 0 : index
    %c0_0 = arith.constant 0 : index
    %0 = vector.load %arg1[%c0, %c0_0] : memref<8x16xf32, #tpu.memory_space<vmem>>, vector<8x16xf32>
    %c0_1 = arith.constant 0 : index
    %c0_2 = arith.constant 0 : index
    %1 = vector.load %arg2[%c0_1, %c0_2] : memref<32x16xf32, #tpu.memory_space<vmem>>, vector<32x16xf32>
    %cst = arith.constant dense<0.000000e+00> : vector<32x8xf32>
    %2 = tpu.matmul %1, %0, %cst {dimension_numbers = #tpu.dot_dimension_numbers<[1], [1], [0], [0], [0, 0, 1, 0], [], []>} : vector<32x16xf32>, vector<8x16xf32>, vector<32x8xf32> -> vector<32x8xf32>
    %c0_3 = arith.constant 0 : index
    %c0_4 = arith.constant 0 : index
    %3 = vector.load %arg3[%c0_3, %c0_4] : memref<32x1xf32, #tpu.memory_space<vmem>>, vector<32x1xf32>
    %4 = vector.broadcast %3 : vector<32x1xf32> to vector<32x8xf32>
    %5 = arith.addf %2, %4 : vector<32x8xf32>
    %cst_5 = arith.constant 0.000000e+00 : f32
    %6 = vector.broadcast %cst_5 : f32 to vector<32x8xf32>
    %7 = arith.maximumf %5, %6 : vector<32x8xf32>
    %c0_6 = arith.constant 0 : index
    %c0_7 = arith.constant 0 : index
    %8 = vector.load %arg4[%c0_6, %c0_7] : memref<32x32xf32, #tpu.memory_space<vmem>>, vector<32x32xf32>
    %cst_8 = arith.constant dense<0.000000e+00> : vector<32x8xf32>
    %9 = tpu.matmul %8, %7, %cst_8 {dimension_numbers = #tpu.dot_dimension_numbers<[1], [0], [0], [1], [0, 0, 1, 1], [], []>} : vector<32x32xf32>, vector<32x8xf32>, vector<32x8xf32> -> vector<32x8xf32>
    %c0_9 = arith.constant 0 : index
    %c0_10 = arith.constant 0 : index
    %10 = vector.load %arg5[%c0_9, %c0_10] : memref<32x1xf32, #tpu.memory_space<vmem>>, vector<32x1xf32>
    %11 = vector.broadcast %10 : vector<32x1xf32> to vector<32x8xf32>
    %12 = arith.addf %9, %11 : vector<32x8xf32>
    %cst_11 = arith.constant 0.000000e+00 : f32
    %13 = vector.broadcast %cst_11 : f32 to vector<32x8xf32>
    %14 = arith.maximumf %12, %13 : vector<32x8xf32>
    %c0_12 = arith.constant 0 : index
    %c0_13 = arith.constant 0 : index
    %15 = vector.load %arg6[%c0_12, %c0_13] : memref<32x1xf32, #tpu.memory_space<vmem>>, vector<32x1xf32>
    %16 = vector.broadcast %15 : vector<32x1xf32> to vector<32x8xf32>
    %17 = arith.mulf %14, %16 : vector<32x8xf32>
    %cst_14 = arith.constant dense<0.000000e+00> : vector<8xf32>
    %18 = vector.multi_reduction <add>, %17, %cst_14 [0] : vector<32x8xf32> to vector<8xf32>
    %19 = vector.shape_cast %18 : vector<8xf32> to vector<1x8xf32>
    %c0_15 = arith.constant 0 : index
    %c0_16 = arith.constant 0 : index
    %20 = memref.load %arg7[%c0_15, %c0_16] : memref<1x1xf32, #tpu.memory_space<smem>>
    %21 = vector.broadcast %20 : f32 to vector<1x8xf32>
    %22 = arith.addf %19, %21 : vector<1x8xf32>
    %c0_17 = arith.constant 0 : index
    %c0_18 = arith.constant 0 : index
    %23 = vector.load %arg8[%c0_17, %c0_18] : memref<1x8xf32, #tpu.memory_space<vmem>>, vector<1x8xf32>
    tpu.vector_store %arg8[%c0_17, %c0_18], %22 {strides = array<i32>} : memref<1x8xf32, #tpu.memory_space<vmem>>, vector<1x8xf32>,
    return
  }
  func.func @transform_0(%arg0: i32) -> (i32, i32) {
    %c0_i32 = arith.constant 0 : i32
    %c0_i32_0 = arith.constant 0 : i32
    return %arg0, %c0_i32 : i32, i32
  }
  func.func @transform_1(%arg0: i32) -> (i32, i32) {
    %c0_i32 = arith.constant 0 : i32
    %c0_i32_0 = arith.constant 0 : i32
    %c0_i32_1 = arith.constant 0 : i32
    return %c0_i32, %c0_i32_0 : i32, i32
  }
  func.func @transform_2(%arg0: i32) -> (i32, i32) {
    %c0_i32 = arith.constant 0 : i32
    %c0_i32_0 = arith.constant 0 : i32
    %c0_i32_1 = arith.constant 0 : i32
    return %c0_i32, %c0_i32_0 : i32, i32
  }
  func.func @transform_3(%arg0: i32) -> (i32, i32) {
    %c0_i32 = arith.constant 0 : i32
    %c0_i32_0 = arith.constant 0 : i32
    %c0_i32_1 = arith.constant 0 : i32
    return %c0_i32, %c0_i32_0 : i32, i32
  }
  func.func @transform_4(%arg0: i32) -> (i32, i32) {
    %c0_i32 = arith.constant 0 : i32
    %c0_i32_0 = arith.constant 0 : i32
    %c0_i32_1 = arith.constant 0 : i32
    return %c0_i32, %c0_i32_0 : i32, i32
  }
  func.func @transform_5(%arg0: i32) -> (i32, i32) {
    %c0_i32 = arith.constant 0 : i32
    %c0_i32_0 = arith.constant 0 : i32
    %c0_i32_1 = arith.constant 0 : i32
    return %c0_i32, %c0_i32_0 : i32, i32
  }
  func.func @transform_6(%arg0: i32) -> (i32, i32) {
    %c0_i32 = arith.constant 0 : i32
    %c0_i32_0 = arith.constant 0 : i32
    %c0_i32_1 = arith.constant 0 : i32
    return %c0_i32, %c0_i32_0 : i32, i32
  }
  func.func @transform_7(%arg0: i32) -> (i32, i32) {
    %c0_i32 = arith.constant 0 : i32
    %c0_i32_0 = arith.constant 0 : i32
    return %c0_i32, %arg0 : i32, i32
  }
}

</mosaic_0001>

<bundles_post_ra>
// kernel: tpu_custom_call.1
= control target key start
LH: loop header
LB: loop body
LE: loop exit
PB: predicated region body
PF: predicated region fallthrough
CT: control target
= control target key end

     0   :  { %vm57_vm0 = vcmask 130048   ;;  %v423_v4 = vmov 0   ;;  %s544_s0 = inlined_call_operand.vmem [shape: f32[8,16], index: 0, kind: input, shape index: {}]   ;;  %s545_s1 = inlined_call_operand.vmem [shape: f32[32,16], index: 1, kind: input, shape index: {}]   ;;  %s546_s2 = inlined_call_operand.vmem [shape: f32[32,1], index: 2, kind: input, shape index: {}]   ;;  %s547_s3 = inlined_call_operand.vmem [shape: f32[32,32], index: 3, kind: input, shape index: {}]   ;;  %s548_s4 = inlined_call_operand.vmem [shape: f32[32,1], index: 4, kind: input, shape index: {}]   ;;  %s549_s5 = inlined_call_operand.vmem [shape: f32[32,1], index: 5, kind: input, shape index: {}]   ;;  %s550_s6 = inlined_call_operand.<no memory space> [shape: f32[1,1], index: 6, kind: input, shape index: {}]   ;;  %s551_s7 = inlined_call_operand.hbm [shape: f32[1,8], index: 7, kind: output, shape index: {}]  }
   0x1   :  { %v28_v0 = vld [vmem:[%s544_s0] sm:$0xff]  ;;  %v36_v2 = vld [vmem:[%s546_s2 + $0x18] sm:$0xff]  ;;  %v30_v3 = vld [vmem:[%s545_s1 + $0x8] sm:$0xff]  ;;  %399 = vset.pattern.permute.xlu0 %v423_v4  ;;  %400 = vset.pattern.permute.xlu1 %v423_v4 }
   0x2   :  { %v29_v1 = vld [vmem:[%s545_s1] sm:$0xff]  ;;  %375 = vmatprep.subr.msk.mxu0 %vm57_vm0, %v28_v0  ;;  %v34_v5 = vld [vmem:[%s546_s2 + $0x8] sm:$0xff]  ;;  %v31_v6 = vld [vmem:[%s545_s1 + $0x10] sm:$0xff]  ;;  %54 = vperm.xlu0 %399, %v36_v2  }
   0x3   :  { %377 = vmatprep.mubr.msk.f32.mxu0 %vm57_vm0, %v29_v1  ;;  %376 = vmatpush3.xpose.msk.msra.mxu0 %vm57_vm0, %v28_v0  ;;  %v35_v7 = vld [vmem:[%s546_s2 + $0x10] sm:$0xff]  ;;  %v33_v8 = vld [vmem:[%s546_s2] sm:$0xff] }
   0x4   :  { %44 = vperm.xlu1 %400, %v34_v5  }
   0x6   :  { %378 = vmatmul.mubr.msk.f32.vlgmr.msra.gmra.mxu0 %vm57_vm0, %v30_v3 }
   0x7   :  { %13 = vsyncpa [#allocation4], 0  ;;  %380 = vmatprep.mubr.msk.f32.mxu0 %vm57_vm0, %v31_v6  ;;  %v32_v9 = vld [vmem:[%s545_s1 + $0x18] sm:$0xff]  ;;  %49 = vperm.xlu0 %399, %v35_v7   ;;  %v166_v10 = vld [vmem:[%s548_s4] sm:$0xff]  ;;  %vm190_vm1 = vcmask 261120   ;;  %vm320_vm2 = vcmask 64512  }
   0x8   :  { %39 = vperm.xlu1 %400, %v33_v8   ;;  %v167_v11 = vld [vmem:[%s548_s4 + $0x8] sm:$0xff]  ;;  %v168_v12 = vld [vmem:[%s548_s4 + $0x10] sm:$0xff]  ;;  %v169_v13 = vld [vmem:[%s548_s4 + $0x18] sm:$0xff]  ;;  %s424_s15 = smov [#allocation3]   ;;  %vm337_vm3 = vcmask 57344  }
   0x9   :  { %v292_v14 = vld [vmem:[%s549_s5] sm:$0xff]  ;;  %v293_v15 = vld [vmem:[%s549_s5 + $0x8] sm:$0xff]  ;;  %v294_v16 = vld [vmem:[%s549_s5 + $0x10] sm:$0xff]  ;;  %s345_s16 = sshll.u32 %s424_s15, 4  ;;  %s346_s16 = int_to_ptr.vmem [resolvable:$true] %s345_s16 }
   0xa   :  { %381 = vmatmul.mubr.msk.f32.gmra.mxu0 %vm57_vm0, %v32_v9  ;;  %v295_v17 = vld [vmem:[%s549_s5 + $0x18] sm:$0xff]  ;;  %v162_v18 = vld [vmem:[%s547_s3] sm:$0xff]  ;;  %v163_v35 = vld [vmem:[%s547_s3 + $0x8] sm:$0xff]  ;;  %s401_s17 = scalar_lea.vmem %s346_s16, 16  ;;  %s405_s18 = scalar_lea.vmem %s346_s16, 32 }
   0xb   :  { %172 = vperm.xlu0 %399, %v166_v10   ;;  %391 = vmatprep.mubr.msk.f32.mxu1 %vm190_vm1, %v162_v18  ;;  %v164_v36 = vld [vmem:[%s547_s3 + $0x10] sm:$0xff]  ;;  %v165_v37 = vld [vmem:[%s547_s3 + $0x18] sm:$0xff]  ;;  %v335_v10 = vstv %s550_s6  ;;  %p402_p0 = scmp.ne.s32.totalorder %s346_s16, %s401_s17  ;;  %p406_p1 = scmp.lt.s32.totalorder %s346_s16, %s346_s16 }
   0xc   :  { %177 = vperm.xlu1 %400, %v167_v11   ;;  %p407_p2 = scmp.lt.s32.totalorder %s405_s18, %s401_s17 }
   0xe   :  { %p408_p3 = por %p407_p2, %p406_p1 }
   0xf   :  { %182 = vperm.xlu0 %399, %v168_v12  }
  0x10   :  { %187 = vperm.xlu1 %400, %v169_v13   ;;  %p409_p4 = pnand %p408_p3, %p402_p0 }
  0x13   :  { %298 = vperm.xlu0 %399, %v292_v14  }
  0x14   :  { %303 = vperm.xlu1 %400, %v293_v15  }
  0x17   :  { %308 = vperm.xlu0 %399, %v294_v16  }
  0x18   :  { %313 = vperm.xlu1 %400, %v295_v17  }
  0x7d   :  { %v55_v19 = vpop.permute.xlu0 %54 }
  0x7f   :  { %v45_v21 = vpop.permute.xlu1 %44 }
  0x82   :  { %v50_v25 = vpop.permute.xlu0 %49 }
  0x83   :  { %v40_v30 = vpop.permute.xlu1 %39 }
  0x86   :  { %v173_v38 = vpop.permute.xlu0 %172 }
  0x87   :  { %v178_v39 = vpop.permute.xlu1 %177 }
  0x8a   :  { %v183_v40 = vpop.permute.xlu0 %182 }
  0x8b   :  { %v188_v41 = vpop.permute.xlu1 %187 }
  0x8e   :  { %v299_v45 = vpop.permute.xlu0 %298 }
  0x8f   :  { %v304_v48 = vpop.permute.xlu1 %303 }
  0x92   :  { %v309_v59 = vpop.permute.xlu0 %308 }
  0x93   :  { %v314_v60 = vpop.permute.xlu1 %313 }
  0xc6   :  { %v379_v20 = vpop.f32.mrf.mxu0 }
  0xc7   :  { %v145_v27 = vadd.f32 %v379_v20, %v45_v21 }
  0xc8   :  { %v139_v22 = vpop.f32.mrf.mxu0 }
  0xc9   :  { %v140_v31 = vadd.f32 %v139_v22, %v40_v30  ;;  %v159_v33 = vmax.f32 %v145_v27, 0.0 }
  0xca   :  { %v382_v23 = vpop.f32.mrf.mxu0 }
  0xcb   :  { %v155_v24 = vadd.f32 %v382_v23, %v55_v19  ;;  %v158_v34 = vmax.f32 %v140_v31, 0.0 }
  0xcc   :  { %v149_v26 = vpop.f32.mrf.mxu0 }
  0xcd   :  { %v161_v28 = vmax.f32 %v155_v24, 0.0  ;;  %v150_v29 = vadd.f32 %v149_v26, %v50_v25 }
  0xcf   :  { %v160_v32 = vmax.f32 %v150_v29, 0.0  ;;  %383 = vmatprep.subr.mxu1 %v161_v28 }
  0xd0   :  { %384 = vmatpush3.msra.mxu1 %v161_v28 }
  0xd1   :  { %385 = vmatprep.subr.mxu1 %v160_v32 }
  0xd2   :  { %386 = vmatpush3.msra.mxu1 %v160_v32 }
  0xd3   :  { %387 = vmatprep.subr.mxu1 %v159_v33 }
  0xd4   :  { %388 = vmatpush3.msra.mxu1 %v159_v33 }
  0xd5   :  { %389 = vmatprep.subr.mxu1 %v158_v34 }
  0xd6   :  { %390 = vmatpush3.msra.mxu1 %v158_v34 }
  0xd7   :  { %392 = vmatmul.mubr.msk.f32.vlgmr.msra.gmra.mxu1 %vm190_vm1, %v163_v35 }
  0xd8   :  { %394 = vmatprep.mubr.msk.f32.mxu1 %vm190_vm1, %v164_v36 }
  0xdb   :  { %395 = vmatmul.mubr.msk.f32.gmra.mxu1 %vm190_vm1, %v165_v37 }
 0x197   :  { %v393_v42 = vpop.f32.mrf.mxu1 }
 0x198   :  { %v275_v43 = vadd.f32 %v393_v42, %v178_v39 }
 0x199   :  { %v269_v44 = vpop.f32.mrf.mxu1 }
 0x19a   :  { %v289_v46 = vmax.f32 %v275_v43, 0.0  ;;  %v270_v47 = vadd.f32 %v269_v44, %v173_v38 }
 0x19b   :  { %v396_v49 = vpop.f32.mrf.mxu1 }
 0x19c   :  { %v288_v50 = vmax.f32 %v270_v47, 0.0  ;;  %v285_v51 = vadd.f32 %v396_v49, %v188_v41  ;;  %v317_v53 = vmul.f32 %v304_v48, %v289_v46 }
 0x19d   :  { %v279_v52 = vpop.f32.mrf.mxu1 }
 0x19e   :  { %v316_v54 = vmul.f32 %v299_v45, %v288_v50  ;;  %v291_v55 = vmax.f32 %v285_v51, 0.0  ;;  %v280_v56 = vadd.f32 %v279_v52, %v183_v40  ;;  %v322_v61 = vsel %vm320_vm2, %v317_v53, 0.0 }
 0x1a0   :  { %v321_v57 = vsel %vm320_vm2, %v316_v54, 0.0  ;;  %v290_v58 = vmax.f32 %v280_v56, 0.0  ;;  %v319_v62 = vmul.f32 %v314_v60, %v291_v55 }
 0x1a1   :  { %v323_v0 = vadd.f32 %v322_v61, %v321_v57 }
 0x1a2   :  { %v318_v63 = vmul.f32 %v309_v59, %v290_v58  ;;  %v326_v3 = vsel %vm320_vm2, %v319_v62, 0.0 }
 0x1a4   :  { %v324_v1 = vsel %vm320_vm2, %v318_v63, 0.0 }
 0x1a5   :  { %v325_v2 = vadd.f32 %v324_v1, %v323_v0 }
 0x1a7   :  { %v327_v4 = vadd.f32 %v326_v3, %v325_v2 }
 0x1a9   :  { %v328_v5 = vrot.slane %v327_v4, 4 }
 0x1ab   :  { %v329_v6 = vadd.f32 %v328_v5, %v327_v4 }
 0x1ad   :  { %v330_v7 = vrot.slane %v329_v6, 2 }
 0x1af   :  { %v331_v8 = vadd.f32 %v330_v7, %v329_v6 }
 0x1b1   :  { %v332_v9 = vrot.slane %v331_v8, 1 }
 0x1b3   :  { %v333_v11 = vadd.f32 %v332_v9, %v331_v8 }
 0x1b5   :  { %v336_v12 = vadd.f32 %v335_v10, %v333_v11 }
 0x1b7   :  { %338 = vst.msk [vmem:[#allocation3] sm:$0x1] %vm337_vm3, %v336_v12 }
 0x1b8   :  { %412 = shalt.err (!%p409_p4)
}
 0x1b9   :  { %348 = dma.vmem_to_hbm [thread:$0]  %s346_s16, 16, %s551_s7, [#allocation4]  }
 0x1ba   :  { %421 = dma.done.wait [#allocation4], 16  }
 0x1bb   :  { %422 = vsyncadd [#allocation4], 4294967280 }
 0x1bc   :  { %352 = vsyncpa [#allocation4], 1 }

</bundles_post_ra>
